<compile_context>
chip_gen: v7x
topology: tpu7x:2x2x1
jax: 0.10.0
libtpu: 0.0.40
codegen_flags: <defaults>
</compile_context>

<pallas_src>
import functools

import jax
import jax.numpy as jnp
from jax.experimental import pallas as pl
from jax.experimental.pallas import tpu as pltpu


def _label_smoothing_kernel(x_ref, t_ref, out_ref, *, confidence, smoothing,
                            n_rows):
    # x_ref: (TILE_N, C) logits, t_ref: (TILE_N, 1) int32, out_ref: (8, 128) f32
    x = x_ref[...].astype(jnp.float32)
    tn, c = x.shape

    # Stable per-row logsumexp; logprobs themselves are never materialized.
    m = jnp.max(x, axis=-1, keepdims=True)                  # (TILE_N, 1)
    lse = jnp.log(jnp.sum(jnp.exp(x - m), axis=-1, keepdims=True))

    # Fused target-gather + smoothing-mean:
    #   w[c] = confidence * 1[c == target] + smoothing / C   (note conf+smooth=1)
    #   loss_row = (m + lse) - sum_c w[c] * x[c]
    cols = jax.lax.broadcasted_iota(jnp.int32, (tn, c), 1)
    w = jnp.where(cols == t_ref[...], confidence + smoothing / c, smoothing / c)
    wsum = jnp.sum(w * x, axis=-1, keepdims=True)           # (TILE_N, 1)
    loss_rows = (m + lse) - wsum                             # (TILE_N, 1)

    if n_rows % tn != 0:
        # Ragged last tile (statically known): padded rows may hold garbage,
        # but nothing leaks across rows, so masking the per-row losses is
        # sufficient — no (TILE_N, C) masking pass needed.
        row_ids = pl.program_id(0) * tn + jax.lax.broadcasted_iota(
            jnp.int32, (tn, 1), 0)
        loss_rows = jnp.where(row_ids < n_rows, loss_rows, 0.0)

    partial = jnp.sum(loss_rows)                             # scalar f32
    # Lane-dense (8, 128) store of this tile's partial sum.
    out_ref[...] = jnp.broadcast_to(partial, out_ref.shape).astype(out_ref.dtype)


def _pick_tile_n(n, c, itemsize):
    # Double-buffered input tile (2 * itemsize bytes/elem) plus ~5 live
    # (TILE_N, C) 4-byte temps must fit a budget conservative enough for
    # v7x's 64 MiB VMEM (and v5e/v6e's 128 MiB).
    budget = 24 * 1024 * 1024
    per_row = c * (2 * itemsize + 5 * 4)
    t = max(8, budget // per_row)
    t = min(t, 1024)
    t = min(t, ((n + 7) // 8) * 8)
    return max(8, (int(t) // 8) * 8)


def label_smoothing_loss(x, target, smoothing=0.1, tile_n=None):
    """Pallas TPU LabelSmoothing forward.

    x: (N, C) logits (f32 or bf16), target: (N,) integer class indices.
    Returns a float32 scalar loss (mean over the batch).
    """
    confidence = 1.0 - smoothing
    n, c = x.shape
    if tile_n is None:
        tile_n = _pick_tile_n(n, c, x.dtype.itemsize)
    tile_n = max(8, (int(tile_n) // 8) * 8)
    num_tiles = pl.cdiv(n, tile_n)

    t2d = target.astype(jnp.int32).reshape(n, 1)
    kernel = functools.partial(
        _label_smoothing_kernel,
        confidence=confidence, smoothing=smoothing, n_rows=n,
    )

    partials = pl.pallas_call(
        kernel,
        out_shape=jax.ShapeDtypeStruct((num_tiles * 8, 128), jnp.float32),
        grid=(num_tiles,),
        in_specs=[
            pl.BlockSpec((tile_n, c), lambda i: (i, 0)),
            pl.BlockSpec((tile_n, 1), lambda i: (i, 0)),
        ],
        out_specs=pl.BlockSpec((8, 128), lambda i: (i, 0)),
        compiler_params=pltpu.CompilerParams(
            dimension_semantics=("parallel",),
            vmem_limit_bytes=48 * 1024 * 1024,
        ),
    )(x, t2d)

    # One (8, 128) block per tile; element [0, 0] holds that tile's partial.
    per_tile = partials.reshape(num_tiles, 8, 128)[:, 0, 0]
    return jnp.sum(per_tile) / n


def _reference(x, target, smoothing=0.1):
    # Pure-JAX reference mirroring the PyTorch module.
    confidence = 1.0 - smoothing
    logprobs = jax.nn.log_softmax(x.astype(jnp.float32), axis=-1)
    nll = -jnp.take_along_axis(
        logprobs, target[:, None].astype(jnp.int32), axis=-1)[:, 0]
    smooth = -jnp.mean(logprobs, axis=-1)
    return jnp.mean(confidence * nll + smoothing * smooth)


if __name__ == "__main__":
    key = jax.random.PRNGKey(0)
    kx, kt = jax.random.split(key)

    # ResNet50-style shapes: batch x num_classes. N=60 (not a multiple of 8)
    # exercises the ragged-last-tile masking path.
    N, C = 60, 1000
    smoothing = 0.1

    x = jax.random.normal(kx, (N, C), dtype=jnp.float32)
    target = jax.random.randint(kt, (N,), 0, C, dtype=jnp.int32)
    ref = _reference(x, target, smoothing=smoothing)

    # Multi-tile path (grid of 4 row tiles, last one partially OOB / masked).
    loss_tiled = jax.block_until_ready(
        label_smoothing_loss(x, target, smoothing=smoothing, tile_n=16))
    assert jnp.allclose(loss_tiled, ref, atol=1e-5, rtol=1e-5), (loss_tiled, ref)

    # Auto tile selection path (single tile covering all rows).
    loss_auto = jax.block_until_ready(
        label_smoothing_loss(x, target, smoothing=smoothing))
    assert jnp.allclose(loss_auto, ref, atol=1e-5, rtol=1e-5), (loss_auto, ref)

    # bf16 logits in HBM (kernel is HBM-bandwidth bound; math stays f32).
    x_bf16 = x.astype(jnp.bfloat16)
    loss_bf16 = jax.block_until_ready(
        label_smoothing_loss(x_bf16, target, smoothing=smoothing, tile_n=16))
    ref_bf16 = _reference(x_bf16, target, smoothing=smoothing)
    assert jnp.allclose(loss_bf16, ref_bf16, atol=1e-4, rtol=1e-4), (
        loss_bf16, ref_bf16)

    print("KERNEL_OK")
</pallas_src>

<mosaic_0001>
module attributes {stable_mosaic.version = 11 : i64} {
  func.func @_label_smoothing_kernel(%arg0: i32, %arg1: memref<16x1000xf32, #tpu.memory_space<vmem>>, %arg2: memref<16x1xi32, #tpu.memory_space<vmem>>, %arg3: memref<8x128xf32, #tpu.memory_space<vmem>>) attributes {dimension_semantics = [#tpu.dimension_semantics<parallel>], iteration_bounds = array<i64: 4>, scalar_prefetch = 0 : i64, scratch_operands = 0 : i64, tpu.core_type = #tpu.core_type<tc>, window_params = [{transform_indices = @transform_0, window_bounds = array<i64: 16, 1000>}, {transform_indices = @transform_1, window_bounds = array<i64: 16, 1>}, {transform_indices = @transform_2, window_bounds = array<i64: 8, 128>}]} {
    %c0 = arith.constant 0 : index
    %c0_0 = arith.constant 0 : index
    %0 = vector.load %arg1[%c0, %c0_0] : memref<16x1000xf32, #tpu.memory_space<vmem>>, vector<16x1000xf32>
    %cst = arith.constant dense<0xFF800000> : vector<16xf32>
    %1 = vector.multi_reduction <maximumf>, %0, %cst [1] : vector<16x1000xf32> to vector<16xf32>
    %2 = vector.shape_cast %1 : vector<16xf32> to vector<16x1xf32>
    %3 = vector.broadcast %2 : vector<16x1xf32> to vector<16x1000xf32>
    %4 = arith.subf %0, %3 : vector<16x1000xf32>
    %5 = math.exp %4 : vector<16x1000xf32>
    %cst_1 = arith.constant dense<0.000000e+00> : vector<16xf32>
    %6 = vector.multi_reduction <add>, %5, %cst_1 [1] : vector<16x1000xf32> to vector<16xf32>
    %7 = vector.shape_cast %6 : vector<16xf32> to vector<16x1xf32>
    %8 = math.log %7 : vector<16x1xf32>
    %9 = tpu.iota {dimensions = array<i32: 1>} : vector<16x1000xi32>
    %c0_2 = arith.constant 0 : index
    %c0_3 = arith.constant 0 : index
    %10 = vector.load %arg2[%c0_2, %c0_3] : memref<16x1xi32, #tpu.memory_space<vmem>>, vector<16x1xi32>
    %11 = vector.broadcast %10 : vector<16x1xi32> to vector<16x1000xi32>
    %12 = arith.cmpi eq, %9, %11 : vector<16x1000xi32>
    %cst_4 = arith.constant 9.001000e-01 : f32
    %cst_5 = arith.constant 9.99999974E-5 : f32
    %13 = vector.broadcast %cst_4 : f32 to vector<16x1000xf32>
    %14 = vector.broadcast %cst_5 : f32 to vector<16x1000xf32>
    %15 = arith.select %12, %13, %14 : vector<16x1000xi1>, vector<16x1000xf32>
    %16 = arith.mulf %15, %0 : vector<16x1000xf32>
    %cst_6 = arith.constant dense<0.000000e+00> : vector<16xf32>
    %17 = vector.multi_reduction <add>, %16, %cst_6 [1] : vector<16x1000xf32> to vector<16xf32>
    %18 = vector.shape_cast %17 : vector<16xf32> to vector<16x1xf32>
    %19 = arith.addf %2, %8 : vector<16x1xf32>
    %20 = arith.subf %19, %18 : vector<16x1xf32>
    %c16_i32 = arith.constant 16 : i32
    %21 = arith.muli %arg0, %c16_i32 : i32
    %22 = tpu.iota {dimensions = array<i32: 0>} : vector<16x1xi32>
    %23 = vector.broadcast %21 : i32 to vector<16x1xi32>
    %24 = arith.addi %23, %22 : vector<16x1xi32>
    %c60_i32 = arith.constant 60 : i32
    %25 = vector.broadcast %c60_i32 : i32 to vector<16x1xi32>
    %26 = arith.cmpi slt, %24, %25 : vector<16x1xi32>
    %cst_7 = arith.constant 0.000000e+00 : f32
    %27 = vector.broadcast %cst_7 : f32 to vector<16x1xf32>
    %28 = arith.select %26, %20, %27 : vector<16x1xi1>, vector<16x1xf32>
    %29 = vector.shape_cast %28 : vector<16x1xf32> to vector<1x16x1xf32>
    %cst_8 = arith.constant dense<0.000000e+00> : vector<1xf32>
    %30 = vector.multi_reduction <add>, %29, %cst_8 [1, 2] : vector<1x16x1xf32> to vector<1xf32>
    %31 = vector.shape_cast %30 : vector<1xf32> to vector<1x1x1xf32>
    %32 = vector.extract %31[0, 0, 0] : f32 from vector<1x1x1xf32>
    %33 = vector.broadcast %32 : f32 to vector<8x128xf32>
    %c0_9 = arith.constant 0 : index
    %c0_10 = arith.constant 0 : index
    %34 = vector.load %arg3[%c0_9, %c0_10] : memref<8x128xf32, #tpu.memory_space<vmem>>, vector<8x128xf32>
    tpu.vector_store %arg3[%c0_9, %c0_10], %33 {strides = array<i32>} : memref<8x128xf32, #tpu.memory_space<vmem>>, vector<8x128xf32>,
    return
  }
  func.func @transform_0(%arg0: i32) -> (i32, i32) {
    %c0_i32 = arith.constant 0 : i32
    %c0_i32_0 = arith.constant 0 : i32
    return %arg0, %c0_i32 : i32, i32
  }
  func.func @transform_1(%arg0: i32) -> (i32, i32) {
    %c0_i32 = arith.constant 0 : i32
    %c0_i32_0 = arith.constant 0 : i32
    return %arg0, %c0_i32 : i32, i32
  }
  func.func @transform_2(%arg0: i32) -> (i32, i32) {
    %c0_i32 = arith.constant 0 : i32
    %c0_i32_0 = arith.constant 0 : i32
    return %arg0, %c0_i32 : i32, i32
  }
}

</mosaic_0001>

<bundles_post_ra>
// kernel: tpu_custom_call.1
= control target key start
LH: loop header
LB: loop body
LE: loop exit
PB: predicated region body
PF: predicated region fallthrough
CT: control target
= control target key end

     0   :  { %7 = vsyncpa [#allocation3], 0  ;;  %s1094_s0 = inlined_call_operand.hbm [shape: f32[60,1000], index: 0, kind: input, shape index: {}]   ;;  %s1095_s1 = inlined_call_operand.vmem [shape: s32[60,1], index: 1, kind: input, shape index: {}]   ;;  %s1096_s2 = inlined_call_operand.hbm [shape: f32[32,128], index: 2, kind: output, shape index: {}]  }
   0x1   :  { %9 = vsyncpa [#allocation3 + $0x1], 0 }
   0x2   :  { %10 = vsyncpa [#allocation4], 0 }
   0x3   :  { %12 = vsyncpa [#allocation4 + $0x1], 0  ;;  %s734_s9 = smov 0   ;;  %s736_s10 = smov 0  }
   0x4   :  { %s738_s11 = smov 0   ;;  %s740_s12 = smov 0  }
   0x5 LB: > { %s755_s13 = sadd.s32 4294967295, %s711_s12   ;;  %s506_s14 = sadd.s32 4294967294, %s711_s12   ;;  %s711_s12 = sphi %s740_s12, %s1108_s12   ;;  %s707_s11 = sphi %s738_s11, %s1107_s11   ;;  %s703_s10 = sphi %s736_s10, %s1106_s10   ;;  %s699_s9 = sphi %s734_s9, %s1105_s9  }
   0x6   : > { %s759_s15 = sadd.s32 1, %s711_s12   ;;  %s25_s16 = sadd.s32 1, %s707_s11 }
   0x7   : > { %s22_s17 = ssub.s32 %s711_s12, %s759_s15  ;;  %p32_p0 = scmp.ne.s32.totalorder %s707_s11, %s703_s10 }
   0x8   : > { %p23_p1 = scmp.eq.s32.totalorder %s22_s17, 0  ;;  %p33_p2 = scmp.eq.s32.totalorder %s711_s12, 0 }
   0x9   : > { %p38_p3 = scmp.ne.s32.totalorder %s703_s10, %s699_s9  ;;  %p39_p4 = scmp.eq.s32.totalorder %s755_s13, 0 }
   0xa   : > { %s771_s18 = scalar_select %p23_p1, %s707_s11, %s25_s16  }
   0xb   : > { %p773_p5 = por %p33_p2, %p32_p0  ;;  %p777_p6 = por %p39_p4, %p38_p3 }
   0xc   : > { %p88_p7 = scmp.eq.s32.totalorder %s755_s13, 3  ;;  %p94_p8 = scmp.eq.s32.totalorder %s506_s14, 3 }
   0xd   : > { %p539_p9 = scmp.lt.s32.totalorder %s711_s12, 4  ;;  %s114_s23 = sand.u32 1, %s707_s11  }
   0xe   : > { %p783_p10 = por %p88_p7, %p32_p0  ;;  %p787_p11 = por %p94_p8, %p38_p3 }
   0xf   : > { %s524_s24 = sshll.u32 %s711_s12, 11  ;;  %s509_s25 = sshll.u32 %s114_s23, 7 }
  0x10   : > { %s1100_s21 = scalar_select %p783_p10, 1, 0 }
  0x11   : > { %s1101_s22 = scalar_select %p787_p11, 1, 0 }
  0x12   : > { %s796_s28 = scalar_lea.hbm %s1094_s0, %s524_s24  ;;  %s118_s29 = scalar_lea.vmem [#allocation2], %s509_s25 }
  0x13   : > { %s126_s30 = sshll.u32 %s118_s29, 4  ;;  %p800_p12 = pnand %p539_p9, %p773_p5  ;;  %s804_s30 = int_to_ptr.vmem [resolvable:$true] %s126_s30 }
  0x14   : > { %s806_s4 = scalar_lea.sflag [#allocation3], %s114_s23  ;;  %s615_s5 = scalar_lea.hbm %s796_s28, 2048 }
  0x15   : > { %p616_p13 = scmp.ne.s32.totalorder %s796_s28, %s615_s5  ;;  %p617_p0 = pneg %p800_p12 }
  0x16   : > { %s620_s8 = scalar_lea.hbm %s1094_s0, 8192  ;;  %p621_p3 = scmp.lt.u32.totalorder %s796_s28, %s1094_s0 }
  0x17   : > { %p618_p1 = pnand %p617_p0, %p616_p13  ;;  %p622_p4 = scmp.lt.u32.totalorder %s620_s8, %s615_s5 }
  0x18   : > { %p624_p7 = scmp.lt.u32.totalorder %s615_s5, %s796_s28 }
  0x19   : > { %p619_p2 = pneg %p618_p1  ;;  %p623_p5 = por %p622_p4, %p621_p3 }
  0x1b   : > { %p625_p8 = por %p624_p7, %p623_p5 }
  0x1d   : > { %p626_p9 = pnand %p625_p8, %p619_p2 }
  0x1f   : > { %629 = shalt.err (!%p626_p9)
}
  0x20   : > { %s630_s17 = scalar_lea.vmem %s804_s30, 2048  ;;  %s713_s19 = smov [#allocation2]  }
  0x21   : > { %p631_p13 = scmp.ne.s32.totalorder %s804_s30, %s630_s17  ;;  %s635_s23 = sshll.u32 %s713_s19, 4  ;;  %s636_s23 = int_to_ptr.vmem [resolvable:$false] %s635_s23 }
  0x22   : > { %s637_s24 = scalar_lea.vmem %s636_s23, 4096  ;;  %p638_p10 = scmp.lt.s32.totalorder %s804_s30, %s636_s23 }
  0x23   : > { %p633_p1 = pnand %p631_p13, %p617_p0  ;;  %p639_p3 = scmp.lt.s32.totalorder %s637_s24, %s630_s17 }
  0x25   : > { %p634_p11 = pneg %p633_p1  ;;  %p640_p4 = por %p639_p3, %p638_p10 }
  0x27   : > { %p641_p5 = pnand %p640_p4, %p634_p11 }
  0x29   : > { %644 = shalt.err (!%p641_p5)
}
  0x2a   : > { %s714_s25 = smov 1024   ;;  %s715_s26 = smov 64  }
  0x2b   : > { %534 = dma.hbm_to_vmem [thread:$0]  (!%p800_p12), %s796_s28, 2048, %s804_s30, %s806_s4, %s714_s25, %s714_s25, %s715_s26  }
  0x2c   : > { %p513_p0 = scmp.ge.s32.totalorder %s711_s12, 1  ;;  %p143_p2 = scmp.lt.s32.totalorder %s711_s12, 5 }
  0x2e   : > { %p144_p7 = pnand %p513_p0, %p143_p2 }
  0x2f   : > { %s837_s27 = sand.u32 (!%p144_p7), 1, %s703_s10  }
  0x30   : > { %147 = sbr.rel (%p144_p7) target bundleno = 627 (0x273), region = 28  ;;  %s514_s29 = sshll.u32 (!%p144_p7), %s837_s27, 7 }
  0x31   : > { %s150_s5 = scalar_lea.sflag (!%p144_p7), [#allocation3], %s837_s27  ;;  %s841_s6 = scalar_lea.vmem (!%p144_p7), [#allocation2], %s514_s29 }
  0x37   : > { %690 = dma.done.wait (%p777_p6), %s150_s5, 2048  }
  0x38   : > { %692 = vsyncadd (%p777_p6), %s150_s5, 4294965248  ;;  %s516_s28 = sshll.u32 %s755_s13, 1  ;;  %v716_v0 = vmov 0   ;;  %v849_v1 = vld [vmem:[%s841_s6] sm:$0xff]  ;;  %v852_v2 = vld [vmem:[%s841_s6 + $0x8] sm:$0xff]  ;;  %vm207_vm0 = vcmask 850944   ;;  %v295_v35 = vlaneseq }
  0x39   : > { %577 = vset.pattern.permute.xlu1 %v716_v0  ;;  %p181_p10 = scmp.lt.s32.totalorder %s516_s28, 7  ;;  %578 = vset.pattern.permute.xlu0 %v716_v0  ;;  %v855_v3 = vld [vmem:[%s841_s6 + $0x10] sm:$0xff]  ;;  %v858_v4 = vld [vmem:[%s841_s6 + $0x18] sm:$0xff]  ;;  %v861_v5 = vld [vmem:[%s841_s6 + $0x20] sm:$0xff]  ;;  %v717_v45 = vmov 0.0001  }
  0x3a   : > { %v864_v6 = vld [vmem:[%s841_s6 + $0x28] sm:$0xff]  ;;  %v202_v7 = vmax.f32 %v849_v1, %v855_v3  ;;  %v869_v8 = vld [vmem:[%s841_s6 + $0x30] sm:$0xff]  ;;  %v872_v9 = vld [vmem:[%s841_s6 + $0x38] sm:$0xff]  ;;  %v203_v10 = vmax.f32 %v852_v2, %v858_v4  ;;  %v296_v36 = vand.u32 127, %v295_v35  ;;  %s518_s7 = sshll.u32 %s755_s13, 4  ;;  %s515_s8 = sshll.u32 %s837_s27, 3 }
  0x3b   : > { %s1110_s28 = smov (!%p181_p10, %s516_s28), 7  ;;  %v877_v11 = vld [vmem:[%s841_s6 + $0x40] sm:$0xff]  ;;  %v208_v13 = vsel %vm207_vm0, %v872_v9, -inf  ;;  %v886_v14 = vld [vmem:[%s841_s6 + $0x48] sm:$0xff]  ;;  %v889_v15 = vld [vmem:[%s841_s6 + $0x50] sm:$0xff]  ;;  %s178_s14 = scalar_lea.vmem [#allocation5], %s515_s8 }
  0x3c   : > { %s517_s30 = sshll.u32 %s1110_s28, 3  ;;  %v204_v12 = vmax.f32 %v202_v7, %v861_v5  ;;  %v892_v16 = vld [vmem:[%s841_s6 + $0x58] sm:$0xff]  ;;  %v205_v17 = vmax.f32 %v203_v10, %v864_v6  ;;  %v896_v18 = vld [vmem:[%s841_s6 + $0x60] sm:$0xff]  ;;  %v899_v19 = vld [vmem:[%s841_s6 + $0x68] sm:$0xff]  ;;  %v213_v20 = vmax.f32 %v877_v11, %v889_v15  ;;  %v297_v37 = vadd.s32 128, %v296_v36  ;;  %s424_s16 = sshll.u32 %s178_s14, 4  ;;  %s1048_s16 = int_to_ptr.vmem [resolvable:$true] %s424_s16 }
  0x3d   : > { %s184_s4 = scalar_lea.vmem %s1095_s1, %s517_s30  ;;  %v214_v21 = vmax.f32 %v886_v14, %v892_v16  ;;  %v907_v23 = vld [vmem:[%s841_s6 + $0x70] sm:$0xff]  ;;  %v910_v24 = vld [vmem:[%s841_s6 + $0x78] sm:$0xff]  ;;  %v298_v39 = vadd.s32 256, %v296_v36  ;;  %v920_v40 = vadd.s32 384, %v296_v36  ;;  %v922_v41 = vadd.s32 512, %v296_v36  ;;  %s520_s17 = sshll.u32 %s755_s13, 7 }
  0x3e   : > { %v206_v22 = vmax.f32 %v204_v12, %v869_v8  ;;  %v304_v25 = vld [vmem:[%s184_s4] sm:$0xff]  ;;  %v209_v26 = vmax.f32 %v205_v17, %v208_v13  ;;  %v215_v27 = vmax.f32 %v213_v20, %v896_v18  ;;  %v218_v29 = vsel %vm207_vm0, %v910_v24, -inf  ;;  %v305_v30 = vld [vmem:[%s184_s4 + $0x8] sm:$0xff]  ;;  %s1053_s25 = scalar_lea.hbm %s1096_s2, %s520_s17  ;;  %s411_s26 = scalar_lea.sflag [#allocation4], %s837_s27 }
  0x3f   : > { %v216_v28 = vmax.f32 %v214_v21, %v899_v19  ;;  %307 = vperm.xlu1 %577, %v304_v25   ;;  %v926_v42 = vadd.s32 640, %v296_v36  ;;  %v933_v44 = vadd.s32 768, %v296_v36  ;;  %v939_v49 = vadd.s32 896, %v296_v36  ;;  %s645_s29 = scalar_lea.vmem %s1048_s16, 128  ;;  %p1103_p11 = scmp.ne.s32.totalorder %s1100_s21, 0 }
  0x40   : > { %v210_v31 = vmax.f32 %v206_v22, %v209_v26  ;;  %v217_v32 = vmax.f32 %v215_v27, %v907_v23  ;;  %p646_p6 = scmp.ne.s32.totalorder %s1048_s16, %s645_s29  ;;  %s718_s13 = smov [#allocation5]  }
  0x41   : > { %v219_v33 = vmax.f32 %v216_v28, %v218_v29  ;;  %s649_s5 = sshll.u32 %s718_s13, 4  ;;  %s650_s5 = int_to_ptr.vmem [resolvable:$false] %s649_s5 }
  0x42   : > { %211 = vmax.xlane.f32.xlu0 %v210_v31  ;;  %p647_p12 = pnand %p646_p6, %p1103_p11  ;;  %s651_s6 = scalar_lea.vmem %s650_s5, 256 }
  0x43   : > { %v220_v34 = vmax.f32 %v217_v32, %v219_v33  ;;  %310 = vperm.xlu1 %577, %v305_v30   ;;  %p652_p9 = scmp.lt.s32.totalorder %s1048_s16, %s650_s5  ;;  %p653_p13 = scmp.lt.s32.totalorder %s651_s6, %s645_s29 }
  0x44   : > { %p648_p8 = pneg %p647_p12 }
  0x45   : > { %p654_p1 = por %p653_p13, %p652_p9 }
  0x46   : > { %221 = vmax.xlane.f32.xlu0 %v220_v34 }
  0x47   : > { %p655_p3 = pnand %p654_p1, %p648_p8 }
  0xbe   : > { %v918_v38 = vpop.permute.xlu1 %307 }
  0xbf   : > { %vm312_vm1 = vcmp.eq.s32.totalorder %v296_v36, %v918_v38  ;;  %vm313_vm2 = vcmp.eq.s32.totalorder %v297_v37, %v918_v38  ;;  %vm314_vm3 = vcmp.eq.s32.totalorder %v298_v39, %v918_v38  ;;  %vm315_vm4 = vcmp.eq.s32.totalorder %v920_v40, %v918_v38 }
  0xc0   : > { %v328_v46 = vsel %vm312_vm1, 0.9001, %v717_v45  ;;  %v329_v47 = vsel %vm313_vm2, 0.9001, %v717_v45  ;;  %vm316_vm5 = vcmp.eq.s32.totalorder %v922_v41, %v918_v38  ;;  %v330_v50 = vsel %vm314_vm3, 0.9001, %v717_v45 }
  0xc1   : > { %v331_v51 = vsel %vm315_vm4, 0.9001, %v717_v45  ;;  %vm317_vm6 = vcmp.eq.s32.totalorder %v926_v42, %v918_v38  ;;  %v344_v57 = vmul.f32 %v328_v46, %v849_v1  ;;  %v345_v58 = vmul.f32 %v329_v47, %v852_v2 }
  0xc2   : > { %v931_v43 = vpop.permute.xlu1 %310  ;;  %vm318_vm9 = vcmp.eq.s32.totalorder %v933_v44, %v918_v38  ;;  %v347_v26 = vmul.f32 %v331_v51, %v858_v4  ;;  %vm319_vm13 = vcmp.eq.s32.totalorder %v939_v49, %v918_v38  ;;  %vm395_vm3 = vcmask 7168  }
  0xc3   : > { %vm320_vm7 = vcmp.eq.s32.totalorder %v296_v36, %v931_v43  ;;  %vm321_vm8 = vcmp.eq.s32.totalorder %v297_v37, %v931_v43  ;;  %v360_v22 = vadd.f32 %v345_v58, %v344_v57  ;;  %vm322_vm10 = vcmp.eq.s32.totalorder %v298_v39, %v931_v43 }
  0xc4   : > { %v336_v12 = vsel %vm320_vm7, 0.9001, %v717_v45  ;;  %v337_v20 = vsel %vm321_vm8, 0.9001, %v717_v45  ;;  %v338_v33 = vsel %vm322_vm10, 0.9001, %v717_v45  ;;  %vm323_vm11 = vcmp.eq.s32.totalorder %v920_v40, %v931_v43 }
  0xc5   : > { %v352_v29 = vmul.f32 %v336_v12, %v877_v11  ;;  %v353_v30 = vmul.f32 %v337_v20, %v886_v14  ;;  %v354_v39 = vmul.f32 %v338_v33, %v889_v15  ;;  %vm324_vm12 = vcmp.eq.s32.totalorder %v922_v41, %v931_v43 }
  0xc6   : > { %vm325_vm14 = vcmp.eq.s32.totalorder %v926_v42, %v931_v43  ;;  %vm326_vm15 = vcmp.eq.s32.totalorder %v933_v44, %v931_v43  ;;  %vm327_vm1 = vcmp.eq.s32.totalorder %v939_v49, %v931_v43 }
  0xc7   : > { %v370_v46 = vadd.f32 %v353_v30, %v352_v29  ;;  %v343_v44 = vsel %vm327_vm1, 0.9001, %v717_v45 }
  0xc9   : > { %v371_v58 = vadd.f32 %v370_v46, %v354_v39 }
  0xcf   : > { %v937_v48 = vpop.xlane.xlu0 %211 }
  0xd0   : > { %v223_v52 = vsub.f32 %v849_v1, %v937_v48  ;;  %v224_v53 = vsub.f32 %v852_v2, %v937_v48  ;;  %v225_v54 = vsub.f32 %v855_v3, %v937_v48  ;;  %v226_v55 = vsub.f32 %v858_v4, %v937_v48 }
  0xd1   : > { %v227_v56 = vsub.f32 %v861_v5, %v937_v48  ;;  %v228_v59 = vsub.f32 %v864_v6, %v937_v48  ;;  %v229_v63 = vsub.f32 %v869_v8, %v937_v48  ;;  %v332_v1 = vsel %vm316_vm5, 0.9001, %v717_v45 }
  0xd2   : > { %v239_v60 = vmul.f32 1.442695, %v223_v52  ;;  %v241_v61 = vmul.f32 1.442695, %v224_v53  ;;  %v243_v0 = vmul.f32 1.442695, %v225_v54  ;;  %v346_v2 = vmul.f32 %v330_v50, %v855_v3 }
  0xd3   : > { %v963_v62 = vpop.xlane.xlu0 %221  ;;  %v245_v10 = vmul.f32 1.442695, %v226_v55  ;;  %v247_v17 = vmul.f32 1.442695, %v227_v56  ;;  %v230_v3 = vsub.f32 %v872_v9, %v937_v48  ;;  %v249_v21 = vmul.f32 1.442695, %v228_v59 }
  0xd4   : > { %v231_v7 = vsub.f32 %v877_v11, %v963_v62  ;;  %579 = vpow2.f32 %v239_v60  ;;  %v232_v13 = vsub.f32 %v886_v14, %v963_v62  ;;  %v251_v25 = vmul.f32 1.442695, %v229_v63 }
  0xd5   : > { %581 = vpow2.f32 %v241_v61  ;;  %v233_v27 = vsub.f32 %v889_v15, %v963_v62  ;;  %v234_v31 = vsub.f32 %v892_v16, %v963_v62  ;;  %v253_v34 = vmul.f32 1.442695, %v230_v3 }
  0xd6   : > { %583 = vpow2.f32 %v243_v0  ;;  %v255_v28 = vmul.f32 1.442695, %v231_v7  ;;  %v257_v32 = vmul.f32 1.442695, %v232_v13  ;;  %v361_v36 = vadd.f32 %v360_v22, %v346_v2 }
  0xd7   : > { %585 = vpow2.f32 %v245_v10  ;;  %v333_v4 = vsel %vm317_vm6, 0.9001, %v717_v45  ;;  %v235_v11 = vsub.f32 %v896_v18, %v963_v62  ;;  %v259_v14 = vmul.f32 1.442695, %v233_v27 }
  0xd8   : > { %587 = vpow2.f32 %v247_v17  ;;  %v348_v37 = vmul.f32 %v332_v1, %v861_v5  ;;  %v236_v47 = vsub.f32 %v899_v19, %v963_v62  ;;  %v261_v40 = vmul.f32 1.442695, %v234_v31 }
  0xd9   : > { %589 = vpow2.f32 %v249_v21  ;;  %v339_v50 = vsel %vm323_vm11, 0.9001, %v717_v45  ;;  %v362_v52 = vadd.f32 %v361_v36, %v347_v26  ;;  %v238_v53 = vsub.f32 %v910_v24, %v963_v62 }
  0xda   : > { %591 = vpow2.f32 %v251_v25  ;;  %v237_v15 = vsub.f32 %v907_v23, %v963_v62  ;;  %v263_v54 = vmul.f32 1.442695, %v235_v11  ;;  %v334_v56 = vsel %vm318_vm9, 0.9001, %v717_v45 }
  0xdb   : > { %593 = vpow2.f32 %v255_v28  ;;  %v355_v57 = vmul.f32 %v339_v50, %v892_v16  ;;  %v349_v41 = vmul.f32 %v333_v4, %v864_v6  ;;  %v265_v60 = vmul.f32 1.442695, %v236_v47 }
  0xdc   : > { %595 = vpow2.f32 %v257_v32  ;;  %v340_v61 = vsel %vm324_vm12, 0.9001, %v717_v45  ;;  %v363_v1 = vadd.f32 %v362_v52, %v348_v37  ;;  %v269_v2 = vmul.f32 1.442695, %v238_v53 }
  0xdd   : > { %597 = vpow2.f32 %v253_v34  ;;  %v267_v10 = vmul.f32 1.442695, %v237_v15  ;;  %v335_v6 = vsel %vm319_vm13, 0.9001, %v717_v45  ;;  %v356_v13 = vmul.f32 %v340_v61, %v896_v18 }
  0xde   : > { %v580_v51 = vpop.eup %579  ;;  %599 = vpow2.f32 %v259_v14  ;;  %v372_v17 = vadd.f32 %v371_v58, %v355_v57  ;;  %v350_v3 = vmul.f32 %v334_v56, %v869_v8  ;;  %v341_v21 = vsel %vm325_vm14, 0.9001, %v717_v45 }
  0xdf   : > { %v582_v5 = vpop.eup %581  ;;  %601 = vpow2.f32 %v261_v40  ;;  %v364_v25 = vadd.f32 %v363_v1, %v349_v41  ;;  %v351_v38 = vmul.f32 %v335_v6, %v872_v9  ;;  %v357_v28 = vmul.f32 %v341_v21, %v899_v19 }
  0xe0   : > { %v271_v55 = vadd.f32 %v582_v5, %v580_v51  ;;  %v584_v59 = vpop.eup %583  ;;  %603 = vpow2.f32 %v263_v54  ;;  %v373_v29 = vadd.f32 %v372_v17, %v356_v13  ;;  %v342_v31 = vsel %vm326_vm15, 0.9001, %v717_v45 }
  0xe1   : > { %v586_v63 = vpop.eup %585  ;;  %605 = vpow2.f32 %v265_v60  ;;  %v365_v33 = vadd.f32 %v364_v25, %v350_v3  ;;  %v366_v4 = vsel %vm207_vm0, %v351_v38, 0.0  ;;  %v358_v11 = vmul.f32 %v342_v31, %v907_v23 }
  0xe2   : > { %v272_v0 = vadd.f32 %v584_v59, %v271_v55  ;;  %v588_v7 = vpop.eup %587  ;;  %607 = vpow2.f32 %v269_v2  ;;  %v374_v14 = vadd.f32 %v373_v29, %v357_v28  ;;  %v359_v37 = vmul.f32 %v343_v44, %v910_v24 }
  0xe3   : > { %v590_v12 = vpop.eup %589  ;;  %609 = vpow2.f32 %v267_v10  ;;  %v367_v39 = vadd.f32 %v366_v4, %v365_v33  ;;  %v386_v57 = vshrl.u32 %v295_v35, 7  ;;  %v388_v58 = vstv %s518_s7 }
  0xe4   : > { %v273_v16 = vadd.f32 %v586_v63, %v272_v0  ;;  %v592_v20 = vpop.eup %591  ;;  %v375_v45 = vadd.f32 %v374_v14, %v358_v11  ;;  %v376_v52 = vsel %vm207_vm0, %v359_v37, 0.0 }
  0xe5   : > { %v594_v42 = vpop.eup %593  ;;  %v387_v59 = vadd.s32 8, %v386_v57  ;;  %v389_v60 = vadd.s32 %v388_v58, %v386_v57 }
  0xe6   : > { %v274_v22 = vadd.f32 %v588_v7, %v273_v16  ;;  %v596_v26 = vpop.eup %595  ;;  %v377_v15 = vadd.f32 %v376_v52, %v375_v45 }
  0xe7   : > { %v598_v18 = vpop.eup %597  ;;  %v281_v8 = vadd.f32 %v596_v26, %v594_v42  ;;  %v390_v0 = vadd.s32 %v388_v58, %v387_v59 }
  0xe8   : > { %v275_v27 = vadd.f32 %v590_v12, %v274_v22  ;;  %v600_v30 = vpop.eup %599  ;;  %v277_v9 = vsel %vm207_vm0, %v598_v18, 0.0 }
  0xe9   : > { %v282_v34 = vadd.f32 %v600_v30, %v281_v8  ;;  %v602_v36 = vpop.eup %601  ;;  %vm392_vm2 = vcmp.lt.s32.totalorder %v390_v0, 60 }
  0xea   : > { %v276_v32 = vadd.f32 %v592_v20, %v275_v27  ;;  %v604_v19 = vpop.eup %603 }
  0xeb   : > { %v283_v49 = vadd.f32 %v602_v36, %v282_v34  ;;  %v606_v47 = vpop.eup %605 }
  0xec   : > { %v278_v43 = vadd.f32 %v277_v9, %v276_v32  ;;  %v608_v40 = vpop.eup %607 }
  0xed   : > { %v284_v46 = vadd.f32 %v604_v19, %v283_v49  ;;  %v610_v51 = vpop.eup %609  ;;  %v287_v5 = vsel %vm207_vm0, %v608_v40, 0.0  ;;  %vm391_vm0 = vcmp.lt.s32.totalorder %v389_v60, 60 }
  0xee   : > { %279 = vadd.xlane.f32.xlu0 %v278_v43 }
  0xef   : > { %v285_v50 = vadd.f32 %v606_v47, %v284_v46 }
  0xf1   : > { %v286_v53 = vadd.f32 %v610_v51, %v285_v50 }
  0xf2   : > { %368 = vadd.xlane.f32.xlu0 %v367_v39 }
  0xf3   : > { %v288_v23 = vadd.f32 %v287_v5, %v286_v53 }
  0xf5   : > { %289 = vadd.xlane.f32.xlu1 %v288_v23 }
  0xf6   : > { %378 = vadd.xlane.f32.xlu0 %v377_v15 }
 0x17b   : > { %v280_v24 = vpop.xlane.xlu0 %279 }
 0x17c   : > { %611 = vlog2.f32 %v280_v24 }
 0x17f   : > { %v369_v61 = vpop.xlane.xlu0 %368 }
 0x182   : > { %v290_v54 = vpop.xlane.xlu1 %289 }
 0x183   : > { %613 = vlog2.f32 %v290_v54  ;;  %v379_v10 = vpop.xlane.xlu0 %378 }
 0x186   : > { %v612_v55 = vpop.eup %611 }
 0x187   : > { %v292_v56 = vmul.f32 0.6931472, %v612_v55 }
 0x189   : > { %v380_v41 = vadd.f32 %v292_v56, %v937_v48 }
 0x18b   : > { %v382_v2 = vsub.f32 %v380_v41, %v369_v61 }
 0x18d   : > { %v614_v63 = vpop.eup %613  ;;  %v393_v12 = vsel %vm391_vm0, %v382_v2, 0.0 }
 0x18e   : > { %v294_v1 = vmul.f32 0.6931472, %v614_v63  ;;  %v396_v6 = vsel %vm395_vm3, %v393_v12, 0.0 }
 0x190   : > { %v381_v7 = vadd.f32 %v294_v1, %v963_v62 }
 0x192   : > { %v383_v16 = vsub.f32 %v381_v7, %v379_v10 }
 0x194   : > { %v394_v35 = vsel %vm392_vm2, %v383_v16, 0.0 }
 0x195   : > { %v397_v13 = vsel %vm395_vm3, %v394_v35, 0.0 }
 0x196   : > { %v398_v48 = vadd.f32 %v397_v13, %v396_v6 }
 0x198   : > { %399 = vadd.xlane.f32.xlu0 %v398_v48 }
 0x225   : > { %v400_v17 = vpop.xlane.xlu0 %399 }
 0x226   : > { %v401_v20 = vrot.slane %v400_v17, 4 }
 0x228   : > { %v402_v3 = vadd.f32 %v401_v20, %v400_v17 }
 0x22a   : > { %v403_v21 = vrot.slane %v402_v3, 2 }
 0x22c   : > { %v404_v42 = vadd.f32 %v403_v21, %v402_v3 }
 0x22e   : > { %v405_v62 = vrot.slane %v404_v42, 1 }
 0x230   : > { %v406_v22 = vadd.f32 %v405_v62, %v404_v42 }
 0x232   : > { %525 = vpush %v406_v22 }
 0x263   : > { %s526_s19 = spop %525 }
 0x264   : > { %v408_v25 = vstv %s526_s19 }
 0x265   : > { %409 = vst [vmem:[%s178_s14] sm:$0xff] %v408_v25 }
 0x266   : > { %658 = shalt.err (!%p655_p3)
}
 0x267   : > { %s659_s27 = scalar_lea.hbm %s1053_s25, 128  ;;  %s663_s20 = scalar_lea.hbm %s1096_s2, 512 }
 0x268   : > { %p660_p4 = scmp.ne.s32.totalorder %s1053_s25, %s659_s27  ;;  %p664_p2 = scmp.lt.u32.totalorder %s1053_s25, %s1096_s2 }
 0x269   : > { %p665_p7 = scmp.lt.u32.totalorder %s663_s20, %s659_s27  ;;  %p667_p6 = scmp.lt.u32.totalorder %s659_s27, %s1053_s25 }
 0x26a   : > { %p661_p5 = pnand %p660_p4, %p1103_p11 }
 0x26b   : > { %p666_p10 = por %p665_p7, %p664_p2 }
 0x26c   : > { %p662_p0 = pneg %p661_p5 }
 0x26d   : > { %p668_p12 = por %p667_p6, %p666_p10 }
 0x26f   : > { %p669_p8 = pnand %p668_p12, %p662_p0 }
 0x271   : > { %672 = shalt.err (!%p669_p8)
}
 0x272   : > { %529 = dma.vmem_to_hbm [thread:$0]  (%p1103_p11), %s1048_s16, 128, %s1053_s25, %s411_s26  }
 0x273 PF: > { %p540_p9 = scmp.ge.s32.totalorder %s711_s12, 2  ;;  %s436_s7 = sand.u32 1, %s699_s9  }
 0x274   : > { %p1104_p13 = scmp.ne.s32.totalorder %s1101_s22, 0  ;;  %s437_s8 = scalar_lea.sflag [#allocation4], %s436_s7 }
 0x276   : > { %p536_p1 = pnand %p540_p9, %p1104_p13 }
 0x278   : > { %694 = dma.done.wait (!%p536_p1), %s437_s8, 128  }
 0x279   : > { %696 = vsyncadd (!%p536_p1), %s437_s8, 4294967168  ;;  %p15_p3 = scmp.ge.s32.totalorder %s759_s15, 6   ;;  %s1105_s9 = smov %s703_s10 }
 0x27a   : > { %s1106_s10 = smov %s707_s11  ;;  %s1107_s11 = smov %s771_s18 }
 0x27b   : > { %s1108_s12 = smov %s759_s15  ;;  %17 = sbr.rel (!%p15_p3) target bundleno = 5 (0x5), region = 76 }
 0x282   :  { %442 = vsyncpa [#allocation3], 1 }
 0x283   :  { %444 = vsyncpa [#allocation3 + $0x1], 1 }
 0x284   :  { %445 = vsyncpa [#allocation4], 1 }
 0x285   :  { %447 = vsyncpa [#allocation4 + $0x1], 1 }

</bundles_post_ra>
